<compile_context>
chip_gen: v7x
topology: tpu7x:2x2x1
jax: 0.10.0
libtpu: 0.0.40
codegen_flags: <defaults>
</compile_context>

<pallas_src>
import jax
import jax.numpy as jnp
from jax.experimental import pallas as pl
from jax.experimental.pallas import tpu as pltpu


PACK = 32                     # samples per lane-dense row (32 * 4 classes = 128 lanes)
FIN, FPAD, HID, CLS = 15, 16, 8, 4
_TILE_ROWS = 16 * PACK        # 512-row quantum -> packed-row dim multiple of 16 (bf16 tile)
_TB_MAX = 65536               # max rows per grid step (amortize ~0.35us/step overhead)
_MIN_STEPS = 2                # >=2 steps when possible so v7x's two TCs both get work


def _net_kernel(x_ref, w1_ref, b1_ref, w2_ref, b2_ref, s_ref, o_ref):
    # x_ref: (R, 512) bf16 = 32 samples x 16 (zero-padded) features per row.
    x = x_ref[...]

    # fc1 + ReLU (block-diagonal weights keep the 32 packed samples independent).
    h = jnp.dot(x, w1_ref[...], preferred_element_type=jnp.float32) + b1_ref[...]
    h = jnp.maximum(h, 0.0)                                               # (R, 256) f32

    # fc10 (cast back to the MXU dtype; accumulate f32).
    logits = jnp.dot(h.astype(w2_ref.dtype), w2_ref[...],
                     preferred_element_type=jnp.float32) + b2_ref[...]    # (R, 128) f32

    # Grouped (per-sample) softmax over each 4-lane class group.  The per-packed-row
    # max is one constant per row -> identical within every group -> same softmax,
    # numerically stable (all shifted logits <= 0) for this net's logit scale.
    m = jnp.max(logits, axis=-1, keepdims=True)                           # (R, 1)
    e = jnp.exp(logits - m)                                               # (R, 128) f32

    # Per-group sums broadcast back to all 4 lanes of their group via a 0/1
    # block-diagonal matrix on the MXU (avoids cross-lane shuffles).  Kept in f32 so
    # rows sum to 1 at f32 precision; clamp guards the all-underflow corner case.
    denom = jnp.dot(e, s_ref[...], preferred_element_type=jnp.float32)    # (R, 128)
    denom = jnp.maximum(denom, jnp.float32(1e-30))

    o_ref[...] = (e * pl.reciprocal(denom)).astype(o_ref.dtype)


def _round_up(n, m):
    return ((n + m - 1) // m) * m


def _tiling(batch):
    """Pick (tile_rows, padded_batch, grid_steps)."""
    bq = _round_up(max(batch, 1), _TILE_ROWS)
    n_quanta = bq // _TILE_ROWS
    steps = pl.cdiv(bq, _TB_MAX)                 # enough steps to stay under _TB_MAX
    if n_quanta >= _MIN_STEPS:
        steps = max(steps, _MIN_STEPS)           # feed both v7x TensorCores
    steps = min(steps, n_quanta)
    tb = _round_up(pl.cdiv(bq, steps), _TILE_ROWS)
    grid = pl.cdiv(bq, tb)
    return tb, grid * tb, grid


def pack_params(w1, b1, w2, b2, mxu_dtype=jnp.bfloat16):
    """Precompute the packed block-diagonal weights ONCE (hoisted out of the forward).

    w1: (15, 8), b1: (8,), w2: (8, 4), b2: (4,)   [w = PyTorch weight.T]
    """
    assert w1.shape == (FIN, HID) and w2.shape == (HID, CLS)
    w1p = jnp.pad(w1.astype(jnp.float32), ((0, FPAD - FIN), (0, 0)))      # zero row 15->16
    eye = jnp.eye(PACK, dtype=jnp.float32)
    w1_bd = jnp.kron(eye, w1p).astype(mxu_dtype)                          # (512, 256)
    w2_bd = jnp.kron(eye, w2.astype(jnp.float32)).astype(mxu_dtype)       # (256, 128)
    b1_t = jnp.tile(b1.astype(jnp.float32).reshape(-1), PACK).reshape(1, PACK * HID)
    b2_t = jnp.tile(b2.astype(jnp.float32).reshape(-1), PACK).reshape(1, PACK * CLS)
    s_grp = jnp.kron(eye, jnp.ones((CLS, CLS), jnp.float32))              # (128, 128) f32
    return w1_bd, b1_t, w2_bd, b2_t, s_grp


@jax.jit
def net_forward(x, packed):
    """x: (B, 15) -> (B, 4) f32 probabilities (rows sum to 1).

    `packed` = pack_params(...) output, computed once and reused across calls.
    """
    w1_bd, b1_t, w2_bd, b2_t, s_grp = packed
    B, F = x.shape
    assert F == FIN

    tb, bp, grid = _tiling(B)
    rows = tb // PACK                                         # packed rows per grid step

    # Cast to the MXU/stream dtype and pad (batch -> bp, features 15 -> 16); these
    # fuse into one cheap op under jit, and the reshape to the packed layout is free.
    xq = jnp.pad(x.astype(w1_bd.dtype), ((0, bp - B), (0, FPAD - FIN)))
    x_packed = xq.reshape(bp // PACK, PACK * FPAD)            # (bp/32, 512)

    out_packed = pl.pallas_call(
        _net_kernel,
        out_shape=jax.ShapeDtypeStruct((bp // PACK, PACK * CLS), jnp.float32),
        grid=(grid,),
        in_specs=[
            pl.BlockSpec((rows, PACK * FPAD), lambda i: (i, 0)),        # x, streamed
            pl.BlockSpec((PACK * FPAD, PACK * HID), lambda i: (0, 0)),  # W1 blockdiag (resident)
            pl.BlockSpec((1, PACK * HID), lambda i: (0, 0)),            # b1 (tiled)
            pl.BlockSpec((PACK * HID, PACK * CLS), lambda i: (0, 0)),   # W2 blockdiag (resident)
            pl.BlockSpec((1, PACK * CLS), lambda i: (0, 0)),            # b2 (tiled)
            pl.BlockSpec((PACK * CLS, PACK * CLS), lambda i: (0, 0)),   # group-sum matrix
        ],
        out_specs=pl.BlockSpec((rows, PACK * CLS), lambda i: (i, 0)),
        compiler_params=pltpu.CompilerParams(
            dimension_semantics=("parallel",),     # v7x: shard the batch grid across both TCs
            vmem_limit_bytes=32 * 1024 * 1024,     # ~7 MiB used at TB=64K; fits v5e/v6e/v7x
        ),
    )(x_packed, w1_bd, b1_t, w2_bd, b2_t, s_grp)

    return out_packed.reshape(bp, CLS)[:B]


def init_params(key):
    """PyTorch Linear default init (U[-k, k], k = 1/sqrt(fan_in))."""
    k1, k2, k3, k4 = jax.random.split(key, 4)
    bound1 = 1.0 / jnp.sqrt(15.0)
    bound2 = 1.0 / jnp.sqrt(8.0)
    w1 = jax.random.uniform(k1, (15, 8), jnp.float32, -bound1, bound1)
    b1 = jax.random.uniform(k2, (8,), jnp.float32, -bound1, bound1)
    w2 = jax.random.uniform(k3, (8, 4), jnp.float32, -bound2, bound2)
    b2 = jax.random.uniform(k4, (4,), jnp.float32, -bound2, bound2)
    return w1, b1, w2, b2


def reference_forward(x, w1, b1, w2, b2):
    h = jnp.maximum(x @ w1 + b1, 0.0)
    logits = h @ w2 + b2
    return jax.nn.softmax(logits, axis=1)


if __name__ == "__main__":
    key = jax.random.PRNGKey(0)
    kx, kp, kx2, kx3 = jax.random.split(key, 4)
    w1, b1, w2, b2 = init_params(kp)

    # Packed weights built ONCE (perf review: hoisted out of the forward call).
    packed = jax.tree_util.tree_map(jax.block_until_ready, pack_params(w1, b1, w2, b2))

    # Small example consistent with the module: batch of 8 states of 15 features.
    B = 8
    x = jax.random.normal(kx, (B, 15), jnp.float32)
    out = jax.block_until_ready(net_forward(x, packed))
    ref = reference_forward(x, w1, b1, w2, b2)
    assert out.shape == (B, 4)
    # bf16 MXU operands -> compare at ~5e-3; rows still sum to 1 at f32 precision.
    assert jnp.allclose(out, ref, atol=5e-3, rtol=5e-3)
    assert jnp.allclose(jnp.sum(out, axis=1), jnp.ones((B,)), atol=1e-4)

    # Batch not a multiple of the packing quantum (exercises padding).
    B2 = 50
    x2 = jax.random.normal(kx2, (B2, 15), jnp.float32)
    out2 = jax.block_until_ready(net_forward(x2, packed))
    ref2 = reference_forward(x2, w1, b1, w2, b2)
    assert out2.shape == (B2, 4)
    assert jnp.allclose(out2, ref2, atol=5e-3, rtol=5e-3)

    # Batch large enough to produce a multi-step grid (exercises the >=2-step path
    # used for v7x dual-TensorCore sharding).
    B3 = 600
    x3 = jax.random.normal(kx3, (B3, 15), jnp.float32)
    out3 = jax.block_until_ready(net_forward(x3, packed))
    ref3 = reference_forward(x3, w1, b1, w2, b2)
    assert out3.shape == (B3, 4)
    assert jnp.allclose(out3, ref3, atol=5e-3, rtol=5e-3)
    assert jnp.allclose(jnp.sum(out3, axis=1), jnp.ones((B3,)), atol=1e-4)

    print("KERNEL_OK")
</pallas_src>

<mosaic_0001>
module attributes {stable_mosaic.version = 11 : i64} {
  func.func @_net_kernel(%arg0: i32, %arg1: memref<16x512xbf16, #tpu.memory_space<vmem>>, %arg2: memref<512x256xbf16, #tpu.memory_space<vmem>>, %arg3: memref<1x256xf32, #tpu.memory_space<vmem>>, %arg4: memref<256x128xbf16, #tpu.memory_space<vmem>>, %arg5: memref<1x128xf32, #tpu.memory_space<vmem>>, %arg6: memref<128x128xf32, #tpu.memory_space<vmem>>, %arg7: memref<16x128xf32, #tpu.memory_space<vmem>>) attributes {dimension_semantics = [#tpu.dimension_semantics<parallel>], iteration_bounds = array<i64: 1>, scalar_prefetch = 0 : i64, scratch_operands = 0 : i64, tpu.core_type = #tpu.core_type<tc>, window_params = [{transform_indices = @transform_0, window_bounds = array<i64: 16, 512>}, {pipeline_mode = #tpu.pipeline_mode<synchronous>, transform_indices = @transform_1, window_bounds = array<i64: 512, 256>}, {pipeline_mode = #tpu.pipeline_mode<synchronous>, transform_indices = @transform_2, window_bounds = array<i64: 1, 256>}, {pipeline_mode = #tpu.pipeline_mode<synchronous>, transform_indices = @transform_3, window_bounds = array<i64: 256, 128>}, {pipeline_mode = #tpu.pipeline_mode<synchronous>, transform_indices = @transform_4, window_bounds = array<i64: 1, 128>}, {pipeline_mode = #tpu.pipeline_mode<synchronous>, transform_indices = @transform_5, window_bounds = array<i64: 128, 128>}, {transform_indices = @transform_6, window_bounds = array<i64: 16, 128>}]} {
    %c0 = arith.constant 0 : index
    %c0_0 = arith.constant 0 : index
    %0 = vector.load %arg1[%c0, %c0_0] : memref<16x512xbf16, #tpu.memory_space<vmem>>, vector<16x512xbf16>
    %c0_1 = arith.constant 0 : index
    %c0_2 = arith.constant 0 : index
    %1 = vector.load %arg2[%c0_1, %c0_2] : memref<512x256xbf16, #tpu.memory_space<vmem>>, vector<512x256xbf16>
    %cst = arith.constant dense<0.000000e+00> : vector<16x256xf32>
    %2 = tpu.matmul %0, %1, %cst {dimension_numbers = #tpu.dot_dimension_numbers<[1], [0], [0], [1], [0, 0, 1, 1], [], []>} : vector<16x512xbf16>, vector<512x256xbf16>, vector<16x256xf32> -> vector<16x256xf32>
    %c0_3 = arith.constant 0 : index
    %c0_4 = arith.constant 0 : index
    %3 = vector.load %arg3[%c0_3, %c0_4] : memref<1x256xf32, #tpu.memory_space<vmem>>, vector<1x256xf32>
    %4 = vector.broadcast %3 : vector<1x256xf32> to vector<16x256xf32>
    %5 = arith.addf %2, %4 : vector<16x256xf32>
    %cst_5 = arith.constant 0.000000e+00 : f32
    %6 = vector.broadcast %cst_5 : f32 to vector<16x256xf32>
    %7 = arith.maximumf %5, %6 : vector<16x256xf32>
    %8 = arith.truncf %7 : vector<16x256xf32> to vector<16x256xbf16>
    %c0_6 = arith.constant 0 : index
    %c0_7 = arith.constant 0 : index
    %9 = vector.load %arg4[%c0_6, %c0_7] : memref<256x128xbf16, #tpu.memory_space<vmem>>, vector<256x128xbf16>
    %cst_8 = arith.constant dense<0.000000e+00> : vector<16x128xf32>
    %10 = tpu.matmul %8, %9, %cst_8 {dimension_numbers = #tpu.dot_dimension_numbers<[1], [0], [0], [1], [0, 0, 1, 1], [], []>} : vector<16x256xbf16>, vector<256x128xbf16>, vector<16x128xf32> -> vector<16x128xf32>
    %c0_9 = arith.constant 0 : index
    %c0_10 = arith.constant 0 : index
    %11 = vector.load %arg5[%c0_9, %c0_10] : memref<1x128xf32, #tpu.memory_space<vmem>>, vector<1x128xf32>
    %12 = vector.broadcast %11 : vector<1x128xf32> to vector<16x128xf32>
    %13 = arith.addf %10, %12 : vector<16x128xf32>
    %cst_11 = arith.constant dense<0xFF800000> : vector<16xf32>
    %14 = vector.multi_reduction <maximumf>, %13, %cst_11 [1] : vector<16x128xf32> to vector<16xf32>
    %15 = vector.shape_cast %14 : vector<16xf32> to vector<16x1xf32>
    %16 = vector.broadcast %15 : vector<16x1xf32> to vector<16x128xf32>
    %17 = arith.subf %13, %16 : vector<16x128xf32>
    %18 = math.exp %17 : vector<16x128xf32>
    %c0_12 = arith.constant 0 : index
    %c0_13 = arith.constant 0 : index
    %19 = vector.load %arg6[%c0_12, %c0_13] : memref<128x128xf32, #tpu.memory_space<vmem>>, vector<128x128xf32>
    %cst_14 = arith.constant dense<0.000000e+00> : vector<16x128xf32>
    %20 = tpu.matmul %18, %19, %cst_14 {dimension_numbers = #tpu.dot_dimension_numbers<[1], [0], [0], [1], [0, 0, 1, 1], [], []>} : vector<16x128xf32>, vector<128x128xf32>, vector<16x128xf32> -> vector<16x128xf32>
    %cst_15 = arith.constant 1.000000e-30 : f32
    %21 = vector.broadcast %cst_15 : f32 to vector<16x128xf32>
    %22 = arith.maximumf %20, %21 : vector<16x128xf32>
    %23 = tpu.reciprocal %22 : vector<16x128xf32> -> vector<16x128xf32>
    %24 = arith.mulf %18, %23 : vector<16x128xf32>
    %c0_16 = arith.constant 0 : index
    %c0_17 = arith.constant 0 : index
    %25 = vector.load %arg7[%c0_16, %c0_17] : memref<16x128xf32, #tpu.memory_space<vmem>>, vector<16x128xf32>
    tpu.vector_store %arg7[%c0_16, %c0_17], %24 {strides = array<i32>} : memref<16x128xf32, #tpu.memory_space<vmem>>, vector<16x128xf32>,
    return
  }
  func.func @transform_0(%arg0: i32) -> (i32, i32) {
    %c0_i32 = arith.constant 0 : i32
    %c0_i32_0 = arith.constant 0 : i32
    return %arg0, %c0_i32 : i32, i32
  }
  func.func @transform_1(%arg0: i32) -> (i32, i32) {
    %c0_i32 = arith.constant 0 : i32
    %c0_i32_0 = arith.constant 0 : i32
    %c0_i32_1 = arith.constant 0 : i32
    return %c0_i32, %c0_i32_0 : i32, i32
  }
  func.func @transform_2(%arg0: i32) -> (i32, i32) {
    %c0_i32 = arith.constant 0 : i32
    %c0_i32_0 = arith.constant 0 : i32
    %c0_i32_1 = arith.constant 0 : i32
    return %c0_i32, %c0_i32_0 : i32, i32
  }
  func.func @transform_3(%arg0: i32) -> (i32, i32) {
    %c0_i32 = arith.constant 0 : i32
    %c0_i32_0 = arith.constant 0 : i32
    %c0_i32_1 = arith.constant 0 : i32
    return %c0_i32, %c0_i32_0 : i32, i32
  }
  func.func @transform_4(%arg0: i32) -> (i32, i32) {
    %c0_i32 = arith.constant 0 : i32
    %c0_i32_0 = arith.constant 0 : i32
    %c0_i32_1 = arith.constant 0 : i32
    return %c0_i32, %c0_i32_0 : i32, i32
  }
  func.func @transform_5(%arg0: i32) -> (i32, i32) {
    %c0_i32 = arith.constant 0 : i32
    %c0_i32_0 = arith.constant 0 : i32
    %c0_i32_1 = arith.constant 0 : i32
    return %c0_i32, %c0_i32_0 : i32, i32
  }
  func.func @transform_6(%arg0: i32) -> (i32, i32) {
    %c0_i32 = arith.constant 0 : i32
    %c0_i32_0 = arith.constant 0 : i32
    return %arg0, %c0_i32 : i32, i32
  }
}

</mosaic_0001>

<bundles_post_ra>
// kernel: net_forward.1
= control target key start
LH: loop header
LB: loop body
LE: loop exit
PB: predicated region body
PF: predicated region fallthrough
CT: control target
= control target key end

     0   :  { %11 = vsyncpa [#allocation3], 0  ;;  %s1516_s0 = inlined_call_operand.vmem [shape: bf16[16,512], index: 0, kind: input, shape index: {}]   ;;  %s1517_s1 = inlined_call_operand.vmem [shape: bf16[512,256], index: 1, kind: input, shape index: {}]   ;;  %s1518_s2 = inlined_call_operand.vmem [shape: f32[1,256], index: 2, kind: input, shape index: {}]   ;;  %s1519_s3 = inlined_call_operand.hbm [shape: bf16[256,128], index: 3, kind: input, shape index: {}]   ;;  %s1520_s4 = inlined_call_operand.vmem [shape: f32[1,128], index: 4, kind: input, shape index: {}]   ;;  %s1521_s5 = inlined_call_operand.hbm [shape: f32[128,128], index: 5, kind: input, shape index: {}]   ;;  %s1522_s6 = inlined_call_operand.vmem [shape: f32[16,128], index: 6, kind: output, shape index: {}]  }
   0x1   :  { %12 = vsyncpa [#allocation5], 0  ;;  %s1235_s21 = smov [#allocation2]   ;;  %s1187_s25 = scalar_lea.hbm %s1519_s3, 2048 }
   0x2   :  { %s24_s22 = sshll.u32 %s1235_s21, 4  ;;  %p1188_p0 = scmp.ne.s32.totalorder %s1519_s3, %s1187_s25  ;;  %s25_s22 = int_to_ptr.vmem [resolvable:$true] %s24_s22 }
   0x3   :  { %p1191_p1 = scmp.lt.u32.totalorder %s1187_s25, %s1519_s3 }
   0x5   :  { %p1193_p2 = pnand %p1191_p1, %p1188_p0 }
   0x7   :  { %1196 = shalt.err (!%p1193_p2)
}
   0x8   :  { %s1197_s30 = scalar_lea.vmem %s25_s22, 2048  ;;  %p1202_p4 = scmp.lt.s32.totalorder %s25_s22, %s25_s22 }
   0x9   :  { %p1198_p3 = scmp.ne.s32.totalorder %s25_s22, %s1197_s30  ;;  %p1203_p5 = scmp.lt.s32.totalorder %s1197_s30, %s1197_s30 }
   0xb   :  { %p1204_p6 = por %p1203_p5, %p1202_p4 }
   0xd   :  { %p1205_p7 = pnand %p1204_p6, %p1198_p3 }
   0xf   :  { %1208 = shalt.err (!%p1205_p7)
}
  0x10   :  { %s1236_s7 = smov 64   ;;  %s1237_s8 = smov 4  }
  0x11   :  { %30 = dma.hbm_to_vmem [thread:$0]  %s1519_s3, 2048, %s25_s22, [#allocation3], %s1236_s7, %s1236_s7, %s1237_s8  }
  0x12   :  { %s1238_s11 = smov [#allocation4]   ;;  %s1209_s15 = scalar_lea.hbm %s1521_s5, 2048 }
  0x13   :  { %s38_s12 = sshll.u32 %s1238_s11, 4  ;;  %p1210_p8 = scmp.ne.s32.totalorder %s1521_s5, %s1209_s15  ;;  %s39_s12 = int_to_ptr.vmem [resolvable:$true] %s38_s12 }
  0x14   :  { %p1213_p9 = scmp.lt.u32.totalorder %s1209_s15, %s1521_s5 }
  0x16   :  { %p1215_p10 = pnand %p1213_p9, %p1210_p8 }
  0x18   :  { %1218 = shalt.err (!%p1215_p10)
}
  0x19   :  { %s1219_s20 = scalar_lea.vmem %s39_s12, 2048  ;;  %p1224_p12 = scmp.lt.s32.totalorder %s39_s12, %s39_s12 }
  0x1a   :  { %p1220_p11 = scmp.ne.s32.totalorder %s39_s12, %s1219_s20  ;;  %p1225_p13 = scmp.lt.s32.totalorder %s1219_s20, %s1219_s20 }
  0x1c   :  { %p1226_p0 = por %p1225_p13, %p1224_p12 }
  0x1e   :  { %p1227_p1 = pnand %p1226_p0, %p1220_p11 }
  0x20   :  { %1230 = shalt.err (!%p1227_p1)
}
  0x21   :  { %s1239_s3 = smov 128   ;;  %s1240_s21 = smov 8  }
  0x22   :  { %44 = dma.hbm_to_vmem [thread:$0]  %s1521_s5, 2048, %s39_s12, [#allocation5], %s1239_s3, %s1239_s3, %s1240_s21  }
  0x23   :  { %1231 = dma.done.wait [#allocation3], 2048  }
  0x24   :  { %1232 = vsyncadd [#allocation3], 4294965248 }
  0x25   :  { %1233 = dma.done.wait [#allocation5], 2048  }
  0x26   :  { %1234 = vsyncadd [#allocation5], 4294965248  ;;  %v1061_v0 = vld [vmem:[%s1517_s1 + $0x4] ss:$8 sps:$4 sm:$0xff]   ;;  %v1065_v2 = vld [vmem:[%s1517_s1] ss:$8 sps:$4 sm:$0xff]  }
  0x27   :  { %v1063_v1 = vld [vmem:[%s1517_s1 + $0x104] ss:$8 sps:$4 sm:$0xff]   ;;  %472 = vmatprep.subr.bf16.mxu1 %v1061_v0  ;;  %v1066_v3 = vld [vmem:[%s1517_s1 + $0x100] ss:$8 sps:$4 sm:$0xff]   ;;  %v1067_v4 = vld [vmem:[%s1517_s1 + $0x14] ss:$8 sps:$4 sm:$0xff]  }
  0x28   :  { %515 = vmatprep.subr.bf16.mxu0 %v1063_v1  ;;  %473 = vmatpush1.bf16.msra.mxu1 %v1065_v2  ;;  %v1069_v5 = vld [vmem:[%s1517_s1 + $0x114] ss:$8 sps:$4 sm:$0xff]   ;;  %v1071_v6 = vld [vmem:[%s1517_s1 + $0x10] ss:$8 sps:$4 sm:$0xff]   ;;  %v1073_v8 = vld [vmem:[%s1517_s1 + $0x24] ss:$8 sps:$4 sm:$0xff]  }
  0x29   :  { %516 = vmatpush1.bf16.msra.mxu0 %v1066_v3  ;;  %474 = vmatprep.subr.bf16.mxu1 %v1067_v4  ;;  %v1072_v7 = vld [vmem:[%s1517_s1 + $0x110] ss:$8 sps:$4 sm:$0xff]   ;;  %v1075_v9 = vld [vmem:[%s1517_s1 + $0x124] ss:$8 sps:$4 sm:$0xff]   ;;  %v1077_v10 = vld [vmem:[%s1517_s1 + $0x20] ss:$8 sps:$4 sm:$0xff]  }
  0x2a   :  { %517 = vmatprep.subr.bf16.mxu0 %v1069_v5  ;;  %v1078_v11 = vld [vmem:[%s1517_s1 + $0x120] ss:$8 sps:$4 sm:$0xff]   ;;  %v1079_v12 = vld [vmem:[%s1517_s1 + $0x34] ss:$8 sps:$4 sm:$0xff]   ;;  %v1083_v14 = vld [vmem:[%s1517_s1 + $0x30] ss:$8 sps:$4 sm:$0xff]  }
  0x2b   :  { %v1081_v13 = vld [vmem:[%s1517_s1 + $0x134] ss:$8 sps:$4 sm:$0xff]   ;;  %v1084_v15 = vld [vmem:[%s1517_s1 + $0x130] ss:$8 sps:$4 sm:$0xff]   ;;  %v1085_v16 = vld [vmem:[%s1517_s1 + $0x44] ss:$8 sps:$4 sm:$0xff]  }
  0x2c   :  { %475 = vmatpush1.bf16.msra.mxu1 %v1071_v6  ;;  %v1087_v17 = vld [vmem:[%s1517_s1 + $0x144] ss:$8 sps:$4 sm:$0xff]   ;;  %v1089_v18 = vld [vmem:[%s1517_s1 + $0x40] ss:$8 sps:$4 sm:$0xff]   ;;  %v1091_v20 = vld [vmem:[%s1517_s1 + $0x54] ss:$8 sps:$4 sm:$0xff]  }
  0x2d   :  { %518 = vmatpush1.bf16.msra.mxu0 %v1072_v7  ;;  %476 = vmatprep.subr.bf16.mxu1 %v1073_v8  ;;  %v1090_v19 = vld [vmem:[%s1517_s1 + $0x140] ss:$8 sps:$4 sm:$0xff]   ;;  %v1093_v21 = vld [vmem:[%s1517_s1 + $0x154] ss:$8 sps:$4 sm:$0xff]   ;;  %v1095_v22 = vld [vmem:[%s1517_s1 + $0x50] ss:$8 sps:$4 sm:$0xff]  }
  0x2e   :  { %519 = vmatprep.subr.bf16.mxu0 %v1075_v9  ;;  %v1096_v23 = vld [vmem:[%s1517_s1 + $0x150] ss:$8 sps:$4 sm:$0xff]   ;;  %v1097_v24 = vld [vmem:[%s1517_s1 + $0x64] ss:$8 sps:$4 sm:$0xff]   ;;  %v1101_v26 = vld [vmem:[%s1517_s1 + $0x60] ss:$8 sps:$4 sm:$0xff]  }
  0x2f   :  { %v1099_v25 = vld [vmem:[%s1517_s1 + $0x164] ss:$8 sps:$4 sm:$0xff]   ;;  %v1102_v27 = vld [vmem:[%s1517_s1 + $0x160] ss:$8 sps:$4 sm:$0xff]   ;;  %v1103_v28 = vld [vmem:[%s1517_s1 + $0x74] ss:$8 sps:$4 sm:$0xff]  }
  0x30   :  { %477 = vmatpush1.bf16.msra.mxu1 %v1077_v10  ;;  %v1105_v29 = vld [vmem:[%s1517_s1 + $0x174] ss:$8 sps:$4 sm:$0xff]   ;;  %v1107_v30 = vld [vmem:[%s1517_s1 + $0x70] ss:$8 sps:$4 sm:$0xff]   ;;  %v1109_v32 = vld [vmem:[%s1517_s1 + $0x84] ss:$8 sps:$4 sm:$0xff]  }
  0x31   :  { %520 = vmatpush1.bf16.msra.mxu0 %v1078_v11  ;;  %478 = vmatprep.subr.bf16.mxu1 %v1079_v12  ;;  %v1108_v31 = vld [vmem:[%s1517_s1 + $0x170] ss:$8 sps:$4 sm:$0xff]   ;;  %v1111_v33 = vld [vmem:[%s1517_s1 + $0x184] ss:$8 sps:$4 sm:$0xff]   ;;  %v1113_v34 = vld [vmem:[%s1517_s1 + $0x80] ss:$8 sps:$4 sm:$0xff]  }
  0x32   :  { %521 = vmatprep.subr.bf16.mxu0 %v1081_v13  ;;  %v1114_v35 = vld [vmem:[%s1517_s1 + $0x180] ss:$8 sps:$4 sm:$0xff]   ;;  %v1115_v36 = vld [vmem:[%s1517_s1 + $0x94] ss:$8 sps:$4 sm:$0xff]   ;;  %v1119_v38 = vld [vmem:[%s1517_s1 + $0x90] ss:$8 sps:$4 sm:$0xff]  }
  0x33   :  { %v1117_v37 = vld [vmem:[%s1517_s1 + $0x194] ss:$8 sps:$4 sm:$0xff]   ;;  %v1120_v39 = vld [vmem:[%s1517_s1 + $0x190] ss:$8 sps:$4 sm:$0xff]   ;;  %v1121_v40 = vld [vmem:[%s1517_s1 + $0xa4] ss:$8 sps:$4 sm:$0xff]  }
  0x34   :  { %479 = vmatpush1.bf16.msra.mxu1 %v1083_v14  ;;  %v1123_v41 = vld [vmem:[%s1517_s1 + $0x1a4] ss:$8 sps:$4 sm:$0xff]   ;;  %v1125_v42 = vld [vmem:[%s1517_s1 + $0xa0] ss:$8 sps:$4 sm:$0xff]   ;;  %v1127_v44 = vld [vmem:[%s1517_s1 + $0xb4] ss:$8 sps:$4 sm:$0xff]  }
  0x35   :  { %522 = vmatpush1.bf16.msra.mxu0 %v1084_v15  ;;  %480 = vmatprep.subr.bf16.mxu1 %v1085_v16  ;;  %v1126_v43 = vld [vmem:[%s1517_s1 + $0x1a0] ss:$8 sps:$4 sm:$0xff]   ;;  %v1129_v45 = vld [vmem:[%s1517_s1 + $0x1b4] ss:$8 sps:$4 sm:$0xff]   ;;  %v1131_v46 = vld [vmem:[%s1517_s1 + $0xb0] ss:$8 sps:$4 sm:$0xff]  }
  0x36   :  { %523 = vmatprep.subr.bf16.mxu0 %v1087_v17  ;;  %v1132_v47 = vld [vmem:[%s1517_s1 + $0x1b0] ss:$8 sps:$4 sm:$0xff]   ;;  %v1133_v48 = vld [vmem:[%s1517_s1 + $0xc4] ss:$8 sps:$4 sm:$0xff]   ;;  %v1137_v52 = vld [vmem:[%s1517_s1 + $0xc0] ss:$8 sps:$4 sm:$0xff]  }
  0x37   :  { %v1159_v49 = vld [vmem:[%s1516_s0 + $0x4] ss:$16 sps:$4 sm:$0xff]   ;;  %v1162_v51 = vld [vmem:[%s1516_s0 + $0xc] ss:$16 sps:$4 sm:$0xff]   ;;  %v1138_v53 = vld [vmem:[%s1517_s1 + $0x1c0] ss:$8 sps:$4 sm:$0xff]  }
  0x38   :  { %481 = vmatpush1.bf16.msra.mxu1 %v1089_v18  ;;  %v1135_v50 = vld [vmem:[%s1517_s1 + $0x1c4] ss:$8 sps:$4 sm:$0xff]   ;;  %504 = vmatprep.mubr.bf16.mxu1 %v1159_v49  ;;  %v1139_v54 = vld [vmem:[%s1517_s1 + $0xd4] ss:$8 sps:$4 sm:$0xff]   ;;  %v1143_v56 = vld [vmem:[%s1517_s1 + $0xd0] ss:$8 sps:$4 sm:$0xff]  }
  0x39   :  { %524 = vmatpush1.bf16.msra.mxu0 %v1090_v19  ;;  %482 = vmatprep.subr.bf16.mxu1 %v1091_v20  ;;  %v1141_v55 = vld [vmem:[%s1517_s1 + $0x1d4] ss:$8 sps:$4 sm:$0xff]   ;;  %v1144_v57 = vld [vmem:[%s1517_s1 + $0x1d0] ss:$8 sps:$4 sm:$0xff]   ;;  %v1145_v58 = vld [vmem:[%s1517_s1 + $0xe4] ss:$8 sps:$4 sm:$0xff]   ;;  %v122_v20 = vlaneseq }
  0x3a   :  { %525 = vmatprep.subr.bf16.mxu0 %v1093_v21  ;;  %547 = vmatprep.mubr.bf16.mxu0 %v1162_v51  ;;  %v1147_v59 = vld [vmem:[%s1517_s1 + $0x1e4] ss:$8 sps:$4 sm:$0xff]   ;;  %v1149_v60 = vld [vmem:[%s1517_s1 + $0xe0] ss:$8 sps:$4 sm:$0xff]   ;;  %v1151_v62 = vld [vmem:[%s1517_s1 + $0xf4] ss:$8 sps:$4 sm:$0xff]  }
  0x3b   :  { %v1150_v61 = vld [vmem:[%s1517_s1 + $0x1e0] ss:$8 sps:$4 sm:$0xff]   ;;  %v1153_v63 = vld [vmem:[%s1517_s1 + $0x1f4] ss:$8 sps:$4 sm:$0xff]   ;;  %v1155_v0 = vld [vmem:[%s1517_s1 + $0xf0] ss:$8 sps:$4 sm:$0xff]  }
  0x3c   :  { %483 = vmatpush1.bf16.msra.mxu1 %v1095_v22  ;;  %v1156_v1 = vld [vmem:[%s1517_s1 + $0x1f0] ss:$8 sps:$4 sm:$0xff]   ;;  %v1163_v2 = vld [vmem:[#allocation2 + $0x40] sm:$0xff]   ;;  %v1165_v6 = vld [vmem:[#allocation2 + $0x48] sm:$0xff]   ;;  %v123_v21 = vshrl.u32 %v122_v20, 7 }
  0x3d   :  { %526 = vmatpush1.bf16.msra.mxu0 %v1096_v23  ;;  %484 = vmatprep.subr.bf16.mxu1 %v1097_v24  ;;  %v1157_v3 = vld [vmem:[%s1516_s0] ss:$16 sps:$4 sm:$0xff]   ;;  %v1160_v4 = vld [vmem:[%s1516_s0 + $0x8] ss:$16 sps:$4 sm:$0xff]  }
  0x3e   :  { %527 = vmatprep.subr.bf16.mxu0 %v1099_v25  ;;  %v1164_v5 = vld [vmem:[#allocation2] sm:$0xff]   ;;  %v1166_v7 = vld [vmem:[#allocation2 + $0x8] sm:$0xff]   ;;  %v1167_v8 = vld [vmem:[#allocation2 + $0x50] sm:$0xff]   ;;  %v124_v22 = vsub.s32 0, %v123_v21  ;;  %v128_v24 = vsub.s32 1, %v123_v21 }
  0x3f   :  { %v1168_v9 = vld [vmem:[#allocation2 + $0x10] sm:$0xff]   ;;  %v1169_v10 = vld [vmem:[#allocation2 + $0x58] sm:$0xff]   ;;  %v1171_v12 = vld [vmem:[#allocation2 + $0x60] sm:$0xff]  }
  0x40   :  { %485 = vmatpush1.bf16.msra.mxu1 %v1101_v26  ;;  %v1170_v11 = vld [vmem:[#allocation2 + $0x18] sm:$0xff]   ;;  %v1172_v13 = vld [vmem:[#allocation2 + $0x20] sm:$0xff]   ;;  %v1173_v14 = vld [vmem:[#allocation2 + $0x68] sm:$0xff]  }
  0x41   :  { %528 = vmatpush1.bf16.msra.mxu0 %v1102_v27  ;;  %486 = vmatprep.subr.bf16.mxu1 %v1103_v28  ;;  %v1174_v15 = vld [vmem:[#allocation2 + $0x28] sm:$0xff]   ;;  %v1175_v16 = vld [vmem:[#allocation2 + $0x70] sm:$0xff]   ;;  %v1177_v18 = vld [vmem:[#allocation2 + $0x78] sm:$0xff]  }
  0x42   :  { %529 = vmatprep.subr.bf16.mxu0 %v1105_v29  ;;  %v1176_v17 = vld [vmem:[#allocation2 + $0x30] sm:$0xff]   ;;  %v1178_v19 = vld [vmem:[#allocation2 + $0x38] sm:$0xff]   ;;  %v120_v23 = vld [vmem:[%s1518_s2] sm:$0x3] }
  0x43   :  { %v125_v25 = vrot.slane %v120_v23, %v124_v22  ;;  %v129_v26 = vrot.slane %v120_v23, %v128_v24  ;;  %v750_v49 = vld [vmem:[#allocation4] sm:$0xff]  ;;  %v752_v51 = vld [vmem:[#allocation4 + $0x10] sm:$0xff] }
  0x44   :  { %487 = vmatpush1.bf16.msra.mxu1 %v1107_v30 }
  0x45   :  { %530 = vmatpush1.bf16.msra.mxu0 %v1108_v31  ;;  %488 = vmatprep.subr.bf16.mxu1 %v1109_v32 }
  0x46   :  { %531 = vmatprep.subr.bf16.mxu0 %v1111_v33 }
  0x48   :  { %489 = vmatpush1.bf16.msra.mxu1 %v1113_v34 }
  0x49   :  { %532 = vmatpush1.bf16.msra.mxu0 %v1114_v35  ;;  %490 = vmatprep.subr.bf16.mxu1 %v1115_v36 }
  0x4a   :  { %533 = vmatprep.subr.bf16.mxu0 %v1117_v37 }
  0x4c   :  { %491 = vmatpush1.bf16.msra.mxu1 %v1119_v38 }
  0x4d   :  { %534 = vmatpush1.bf16.msra.mxu0 %v1120_v39  ;;  %492 = vmatprep.subr.bf16.mxu1 %v1121_v40 }
  0x4e   :  { %535 = vmatprep.subr.bf16.mxu0 %v1123_v41 }
  0x50   :  { %493 = vmatpush1.bf16.msra.mxu1 %v1125_v42 }
  0x51   :  { %536 = vmatpush1.bf16.msra.mxu0 %v1126_v43  ;;  %494 = vmatprep.subr.bf16.mxu1 %v1127_v44 }
  0x52   :  { %537 = vmatprep.subr.bf16.mxu0 %v1129_v45 }
  0x54   :  { %495 = vmatpush1.bf16.msra.mxu1 %v1131_v46 }
  0x55   :  { %538 = vmatpush1.bf16.msra.mxu0 %v1132_v47  ;;  %496 = vmatprep.subr.bf16.mxu1 %v1133_v48 }
  0x56   :  { %539 = vmatprep.subr.bf16.mxu0 %v1135_v50  ;;  %v751_v50 = vld [vmem:[#allocation4 + $0x8] sm:$0xff] }
  0x58   :  { %497 = vmatpush1.bf16.msra.mxu1 %v1137_v52  ;;  %v1015_v52 = vpack.c.bf16 %v751_v50, %v750_v49 }
  0x59   :  { %540 = vmatpush1.bf16.msra.mxu0 %v1138_v53  ;;  %498 = vmatprep.subr.bf16.mxu1 %v1139_v54  ;;  %v753_v53 = vld [vmem:[#allocation4 + $0x18] sm:$0xff] }
  0x5a   :  { %541 = vmatprep.subr.bf16.mxu0 %v1141_v55  ;;  %v1019_v54 = vpack.c.bf16 %v753_v53, %v752_v51  ;;  %v754_v55 = vld [vmem:[#allocation4 + $0x20] sm:$0xff] }
  0x5c   :  { %499 = vmatpush1.bf16.msra.mxu1 %v1143_v56  ;;  %v755_v56 = vld [vmem:[#allocation4 + $0x28] sm:$0xff] }
  0x5d   :  { %542 = vmatpush1.bf16.msra.mxu0 %v1144_v57  ;;  %500 = vmatprep.subr.bf16.mxu1 %v1145_v58  ;;  %v1023_v57 = vpack.c.bf16 %v755_v56, %v754_v55  ;;  %v756_v58 = vld [vmem:[#allocation4 + $0x30] sm:$0xff] }
  0x5e   :  { %543 = vmatprep.subr.bf16.mxu0 %v1147_v59  ;;  %v757_v59 = vld [vmem:[#allocation4 + $0x38] sm:$0xff] }
  0x60   :  { %501 = vmatpush1.bf16.msra.mxu1 %v1149_v60  ;;  %v1027_v60 = vpack.c.bf16 %v757_v59, %v756_v58 }
  0x61   :  { %544 = vmatpush1.bf16.msra.mxu0 %v1150_v61  ;;  %502 = vmatprep.subr.bf16.mxu1 %v1151_v62 }
  0x62   :  { %545 = vmatprep.subr.bf16.mxu0 %v1153_v63  ;;  %v923_v63 = vld [vmem:[%s1520_s4] ss:$0 sm:$0xff] }
  0x64   :  { %503 = vmatpush1.bf16.msra.mxu1 %v1155_v0 }
  0x65   :  { %546 = vmatpush1.bf16.msra.mxu0 %v1156_v1  ;;  %1016 = vmatprep.subr.bf16.mxu1 %v1015_v52 }
  0x66   :  { %940 = vmatprep.subr.bf16.mxu0 %v1163_v2 }
  0x67   :  { %505 = vmatmul.mubr.bf16.vlgmr.msra.gmra.mrb[0].mxu1 %v1157_v3 }
  0x68   :  { %548 = vmatmul.mubr.bf16.vlgmr.msra.gmra.mrb[0].mxu0 %v1160_v4  ;;  %1018 = vmatpush3.bf16.msra.mxu1 %v1015_v52 }
  0x69   :  { %941 = vmatpush3.bf16.msra.mxu0 %v1164_v5  ;;  %1020 = vmatprep.subr.bf16.mxu1 %v1019_v54 }
  0x6a   :  { %942 = vmatprep.subr.bf16.mxu0 %v1165_v6  ;;  %v758_v6 = vld [vmem:[#allocation4 + $0x40] sm:$0xff] }
  0x6c   :  { %1022 = vmatpush3.bf16.msra.mxu1 %v1019_v54 }
  0x6d   :  { %943 = vmatpush3.bf16.msra.mxu0 %v1166_v7  ;;  %1024 = vmatprep.subr.bf16.mxu1 %v1023_v57  ;;  %v759_v7 = vld [vmem:[#allocation4 + $0x48] sm:$0xff] }
  0x6e   :  { %944 = vmatprep.subr.bf16.mxu0 %v1167_v8  ;;  %v1031_v8 = vpack.c.bf16 %v759_v7, %v758_v6 }
  0x70   :  { %1026 = vmatpush3.bf16.msra.mxu1 %v1023_v57 }
  0x71   :  { %945 = vmatpush3.bf16.msra.mxu0 %v1168_v9  ;;  %1028 = vmatprep.subr.bf16.mxu1 %v1027_v60  ;;  %v760_v9 = vld [vmem:[#allocation4 + $0x50] sm:$0xff] }
  0x72   :  { %946 = vmatprep.subr.bf16.mxu0 %v1169_v10  ;;  %v761_v10 = vld [vmem:[#allocation4 + $0x58] sm:$0xff] }
  0x74   :  { %1030 = vmatpush3.bf16.msra.mxu1 %v1027_v60 }
  0x75   :  { %947 = vmatpush3.bf16.msra.mxu0 %v1170_v11  ;;  %1032 = vmatprep.subr.bf16.mxu1 %v1031_v8  ;;  %v1035_v11 = vpack.c.bf16 %v761_v10, %v760_v9 }
  0x76   :  { %948 = vmatprep.subr.bf16.mxu0 %v1171_v12  ;;  %v762_v12 = vld [vmem:[#allocation4 + $0x60] sm:$0xff] }
  0x78   :  { %1034 = vmatpush3.bf16.msra.mxu1 %v1031_v8 }
  0x79   :  { %949 = vmatpush3.bf16.msra.mxu0 %v1172_v13  ;;  %1036 = vmatprep.subr.bf16.mxu1 %v1035_v11  ;;  %v763_v13 = vld [vmem:[#allocation4 + $0x68] sm:$0xff] }
  0x7a   :  { %950 = vmatprep.subr.bf16.mxu0 %v1173_v14  ;;  %v764_v14 = vld [vmem:[#allocation4 + $0x70] sm:$0xff] }
  0x7c   :  { %1038 = vmatpush3.bf16.msra.mxu1 %v1035_v11 }
  0x7d   :  { %951 = vmatpush3.bf16.msra.mxu0 %v1174_v15  ;;  %v1039_v15 = vpack.c.bf16 %v763_v13, %v762_v12 }
  0x7e   :  { %952 = vmatprep.subr.bf16.mxu0 %v1175_v16  ;;  %v765_v16 = vld [vmem:[#allocation4 + $0x78] sm:$0xff] }
  0x7f   :  { %1040 = vmatprep.subr.bf16.mxu1 %v1039_v15 }
  0x80   :  { %1042 = vmatpush3.bf16.msra.mxu1 %v1039_v15 }
  0x81   :  { %953 = vmatpush3.bf16.msra.mxu0 %v1176_v17  ;;  %v1043_v17 = vpack.c.bf16 %v765_v16, %v764_v14 }
  0x82   :  { %954 = vmatprep.subr.bf16.mxu0 %v1177_v18 }
  0x83   :  { %1044 = vmatprep.subr.bf16.mxu1 %v1043_v17 }
  0x84   :  { %1046 = vmatpush3.bf16.msra.mxu1 %v1043_v17 }
  0x85   :  { %955 = vmatpush3.bf16.msra.mxu0 %v1178_v19 }
 0x13a   :  { %v506_v27 = vpop.f32.mrb[0].mxu1 }
 0x13b   :  { %v549_v28 = vpop.f32.mrb[0].mxu0  ;;  %v507_v29 = vadd.f32 %v506_v27, %v125_v25  ;;  %v508_v30 = vpop.f32.mrb[1].mxu1 }
 0x13c   :  { %v551_v31 = vpop.f32.mrb[1].mxu0  ;;  %v509_v32 = vadd.f32 %v508_v30, %v129_v26  ;;  %v510_v33 = vpop.f32.mrb[2].mxu1 }
 0x13d   :  { %v553_v34 = vpop.f32.mrb[2].mxu0  ;;  %v550_v35 = vadd.f32 %v549_v28, %v507_v29  ;;  %v511_v36 = vadd.f32 %v510_v33, %v125_v25  ;;  %v512_v37 = vpop.f32.mrb[3].mxu1 }
 0x13e   :  { %v555_v38 = vpop.f32.mrb[3].mxu0  ;;  %v552_v39 = vadd.f32 %v551_v31, %v509_v32  ;;  %v513_v40 = vadd.f32 %v512_v37, %v129_v26 }
 0x13f   :  { %v554_v41 = vadd.f32 %v553_v34, %v511_v36  ;;  %v558_v43 = vmax.f32 %v550_v35, 0.0 }
 0x140   :  { %v556_v42 = vadd.f32 %v555_v38, %v513_v40  ;;  %v559_v45 = vmax.f32 %v552_v39, 0.0 }
 0x141   :  { %v560_v44 = vmax.f32 %v554_v41, 0.0 }
 0x142   :  { %v561_v46 = vmax.f32 %v556_v42, 0.0 }
 0x143   :  { %v562_v47 = vpack.c.bf16 %v560_v44, %v558_v43 }
 0x144   :  { %v563_v48 = vpack.c.bf16 %v561_v46, %v559_v45 }
 0x146   :  { %731 = vmatprep.mubr.bf16.mxu0 %v563_v48 }
 0x147   :  { %732 = vmatmul.mubr.bf16.vlgmr.msra.gmra.mrb[4].mxu0 %v562_v47 }
 0x21a   :  { %v956_v61 = vpop.f32.mrb[4].mxu0 }
 0x21b   :  { %v957_v62 = vpop.f32.mrb[5].mxu0 }
 0x21c   :  { %v958_v0 = vadd.f32 %v957_v62, %v956_v61  ;;  %v959_v1 = vpop.f32.mrb[6].mxu0 }
 0x21d   :  { %v960_v2 = vpop.f32.mrb[7].mxu0 }
 0x21e   :  { %v961_v3 = vadd.f32 %v960_v2, %v959_v1  ;;  %v734_v4 = vadd.f32 %v958_v0, %v923_v63 }
 0x220   :  { %740 = vmax.xlane.f32.xlu0 %v734_v4  ;;  %v737_v5 = vadd.f32 %v961_v3, %v923_v63 }
 0x224   :  { %742 = vmax.xlane.f32.xlu0 %v737_v5 }
 0x2ad   :  { %v741_v18 = vpop.xlane.xlu0 %740 }
 0x2ae   :  { %v744_v19 = vsub.f32 %v734_v4, %v741_v18 }
 0x2b0   :  { %v746_v20 = vmul.f32 1.442695, %v744_v19 }
 0x2b1   :  { %v743_v21 = vpop.xlane.xlu0 %742 }
 0x2b2   :  { %1179 = vpow2.f32 %v746_v20  ;;  %v745_v22 = vsub.f32 %v737_v5, %v743_v21 }
 0x2b4   :  { %v748_v23 = vmul.f32 1.442695, %v745_v22 }
 0x2b6   :  { %1181 = vpow2.f32 %v748_v23 }
 0x2bc   :  { %v1180_v24 = vpop.eup %1179 }
 0x2bd   :  { %1012 = vmatprep.mubr.f32.mxu1 %v1180_v24 }
 0x2c0   :  { %v1182_v25 = vpop.eup %1181 }
 0x2c1   :  { %1013 = vmatmul.mubr.f32.vlgmr.msra.gmra.mrb[4].mxu1 %v1182_v25 }
 0x394   :  { %v1014_v26 = vpop.f32.mrb[4].mxu1 }
 0x395   :  { %v842_v27 = vmax.f32 %v1014_v26, 1e-30  ;;  %v832_v28 = vpop.f32.mrb[5].mxu1 }
 0x396   :  { %v841_v29 = vmax.f32 %v832_v28, 1e-30 }
 0x397   :  { %1183 = vrcp.f32 %v842_v27 }
 0x398   :  { %1185 = vrcp.f32 %v841_v29 }
 0x3a1   :  { %v1184_v30 = vpop.eup %1183 }
 0x3a2   :  { %v1186_v31 = vpop.eup %1185  ;;  %v846_v32 = vmul.f32 %v1184_v30, %v1182_v25 }
 0x3a3   :  { %v845_v33 = vmul.f32 %v1186_v31, %v1180_v24 }
 0x3a4   :  { %848 = vst [vmem:[%s1522_s6 + $0x8] sm:$0xff] %v846_v32 }
 0x3a5   :  { %847 = vst [vmem:[%s1522_s6] sm:$0xff] %v845_v33 }
 0x3a6   :  { %853 = vsyncpa [#allocation3], 1 }
 0x3a7   :  { %854 = vsyncpa [#allocation5], 1 }

</bundles_post_ra>
